<compile_context>
chip_gen: v7x
topology: tpu7x:2x2x1
jax: 0.10.0
libtpu: 0.0.40
codegen_flags: <defaults>
</compile_context>

<pallas_src>
import functools
import math

import jax
import jax.numpy as jnp
from jax import lax
from jax.experimental import pallas as pl
from jax.experimental.pallas import tpu as pltpu

LN_EPS = 1e-12
NEG_INF = -1e30


# --------------------------- budgets / tile pickers ---------------------------
def _vmem_limit_bytes():
    """Generation-aware scoped-VMEM budget (~80% of per-core physical VMEM)."""
    try:
        kind = jax.devices()[0].device_kind.lower()
    except Exception:
        kind = ""
    phys = 64 * 2**20 if "v7" in kind else 128 * 2**20        # v7x: 64 MiB / TC
    try:  # prefer the authoritative number when the query is available
        cap = getattr(pltpu.get_tpu_info(), "vmem_capacity_bytes", None)
        if cap:
            phys = min(phys, int(cap))
    except Exception:
        pass
    return int(phys * 0.80)


def _round_up(x, m):
    return ((x + m - 1) // m) * m


def _pick_row_tile(n, bytes_per_row=None, budget=None, cap=1024):
    """Largest pow2-ish row tile dividing n that fits the VMEM budget."""
    if n % 8 != 0:
        return n
    cands = [t for t in (1024, 512, 256, 128, 64, 32, 16, 8)
             if t <= cap and n % t == 0]
    if not cands:
        return n
    if n <= 64:
        return 8                         # exercise the grid at toy sizes
    if bytes_per_row and budget:
        for t in cands:
            if t * bytes_per_row <= budget:
                return t
        return cands[-1]
    return cands[0]


def _pick_class_tile(c_pad, h, py_pad, tr, budget):
    """Class-tile for the heads kernels: streamed weight + output blocks fit."""
    for tc in (4096, 2048, 1024, 512, 256, 128):
        if c_pad % tc:
            continue
        need = (2 * h * tc * 2           # wh tile (bf16, double-buffered)
                + 2 * py_pad * tc * 2    # zipy tile (bf16, double-buffered)
                + 6 * tr * tc * 2)       # lh / pf blocks (bf16, double-buffered)
        if need <= budget:
            return tc
    return min(128, c_pad)


def _ffn_chunk(i_dim):
    """Static chunk of the FFN intermediate dim (cuts (S, I) 'mid' residency)."""
    if i_dim <= 1024:
        return i_dim
    for c in (1024, 512, 256):
        if i_dim % c == 0:
            return c
    return i_dim


# Constant-index weight spec: resident across the grid, so a single buffer is
# enough (default double-buffering would duplicate the full weight footprint).
def _make_const_spec():
    try:
        pl.BlockSpec((8, 128), lambda i: (0, 0), pipeline_mode=pl.Buffered(1))

        def make(block_shape):
            zeros = (0,) * len(block_shape)
            return pl.BlockSpec(block_shape, lambda *_: zeros,
                                pipeline_mode=pl.Buffered(1))
    except Exception:                      # fallback: no pipeline_mode kwarg
        def make(block_shape):
            zeros = (0,) * len(block_shape)
            return pl.BlockSpec(block_shape, lambda *_: zeros)
    return make


_const_spec = _make_const_spec()


def _cparams(dim_sem, vmem_limit):
    return pltpu.CompilerParams(dimension_semantics=dim_sem,
                                vmem_limit_bytes=vmem_limit)


# ----------------------------- in-kernel helpers -----------------------------
def _layer_norm(x, gamma, beta):
    mu = jnp.mean(x, axis=-1, keepdims=True)
    var = jnp.mean(jnp.square(x - mu), axis=-1, keepdims=True)
    return (x - mu) * lax.rsqrt(var + LN_EPS) * gamma + beta


def _softmax(x, approx=True):
    m = jnp.max(x, axis=-1, keepdims=True)
    e = jnp.exp(x - m)
    s = jnp.sum(e, axis=-1, keepdims=True)
    if approx:
        return e * pl.reciprocal(s, approx=True)     # divide on the EUP slot
    return e / s


# --------------------------------- kernels -----------------------------------
def gru_last_hidden_kernel(x_ref, wih_ref, whh_ref, bih_ref, bhh_ref, h_ref):
    """torch.nn.GRU (batch_first) final hidden state for one tile of rows.

    x_ref: [T, tile_n, D] time-major, gate order (r, z, n) as in torch.nn.GRU.
    The input projection is hoisted out of the recurrence (single MXU matmul,
    kept bf16-resident); only the serial h @ Whh matmul stays in the unrolled
    time loop.  The row tile is split into two independent recurrence chains so
    the MXU matmul of one half can overlap the VPU/EUP gate math of the other.
    """
    T, N, D = x_ref.shape
    H = h_ref.shape[-1]
    whh = whh_ref[...]
    bih = bih_ref[...]
    bhh = bhh_ref[...]

    x_all = x_ref[...].astype(jnp.bfloat16).reshape(T * N, D)
    gx_all = jnp.dot(x_all, wih_ref[...], preferred_element_type=jnp.float32)
    gx_all = gx_all.astype(jnp.bfloat16).reshape(T, N, 3 * H)   # bf16 residency

    def run_chain(gx_chain, rows):
        h = jnp.zeros((rows, H), jnp.float32)
        for t in range(T):                      # T <= 10: static unroll
            gx = gx_chain[t].astype(jnp.float32) + bih
            gh = jnp.dot(h.astype(jnp.bfloat16), whh,
                         preferred_element_type=jnp.float32) + bhh
            r = jax.nn.sigmoid(gx[:, :H] + gh[:, :H])
            z = jax.nn.sigmoid(gx[:, H:2 * H] + gh[:, H:2 * H])
            n = jnp.tanh(gx[:, 2 * H:] + r * gh[:, 2 * H:])
            h = (1.0 - z) * n + z * h
        return h

    if N % 32 == 0:                             # two independent chains -> ILP
        half = N // 2
        h_ref[:half, :] = run_chain(gx_all[:, :half, :], half)
        h_ref[half:, :] = run_chain(gx_all[:, half:, :], half)
    else:
        h_ref[...] = run_chain(gx_all, N)


def embed_ln_kernel(we_ref, pe_ref, te_ref, py_ref, sk_ref, g_ref, b_ref, out_ref):
    """BERT embeddings: word + position + token_type + (gru_py + gru_sk), LN."""
    s = we_ref[...] + pe_ref[...] + te_ref[...] + py_ref[...] + sk_ref[...]
    out_ref[...] = _layer_norm(s, g_ref[...], b_ref[...]).astype(out_ref.dtype)


def encoder_layer_kernel(x_ref, amask_ref,
                         wq_ref, bq_ref, wk_ref, bk_ref, wv_ref, bv_ref,
                         wo_ref, bo_ref, ln1_g_ref, ln1_b_ref,
                         w1_ref, b1_ref, w2_ref, b2_ref, ln2_g_ref, ln2_b_ref,
                         out_ref, ctx_sc, *, num_heads):
    """One fused BERT layer (self-attention + FFN) for one batch element."""
    S, H = x_ref.shape
    dh = H // num_heads
    scale = 1.0 / math.sqrt(dh)

    xb = x_ref[...]                                 # bf16 activation (MXU input)
    x = xb.astype(jnp.float32)                      # f32 residual / LN path
    amask = amask_ref[...]                          # [1, S] additive key mask

    q = (jnp.dot(xb, wq_ref[...], preferred_element_type=jnp.float32)
         + bq_ref[...]) * scale                     # fold 1/sqrt(dh) into q
    k = jnp.dot(xb, wk_ref[...], preferred_element_type=jnp.float32) + bk_ref[...]
    v = jnp.dot(xb, wv_ref[...], preferred_element_type=jnp.float32) + bv_ref[...]
    qb = q.astype(jnp.bfloat16)                     # cast once, slice per head
    kb = k.astype(jnp.bfloat16)
    vb = v.astype(jnp.bfloat16)

    for h in range(num_heads):                      # static, small, unrolled
        sl = slice(h * dh, (h + 1) * dh)
        s = jnp.einsum('qd,kd->qk', qb[:, sl], kb[:, sl],
                       preferred_element_type=jnp.float32)
        p = _softmax(s + amask, approx=True)
        ctx_sc[:, sl] = jnp.dot(p.astype(jnp.bfloat16), vb[:, sl],
                                preferred_element_type=jnp.float32)

    attn = jnp.dot(ctx_sc[...].astype(jnp.bfloat16), wo_ref[...],
                   preferred_element_type=jnp.float32) + bo_ref[...]
    h1 = _layer_norm(attn + x, ln1_g_ref[...], ln1_b_ref[...])
    h1b = h1.astype(jnp.bfloat16)

    I = w1_ref.shape[1]
    ck = _ffn_chunk(I)                              # chunk the intermediate dim
    y = jnp.zeros((S, H), jnp.float32)
    for c0 in range(0, I, ck):
        mid = (jnp.dot(h1b, w1_ref[:, c0:c0 + ck],
                       preferred_element_type=jnp.float32)
               + b1_ref[:, c0:c0 + ck])
        mid = jax.nn.gelu(mid, approximate=True)    # TODO(synk): erf-GELU in HF BERT
        y = y + jnp.dot(mid.astype(jnp.bfloat16), w2_ref[c0:c0 + ck, :],
                        preferred_element_type=jnp.float32)
    y = y + b2_ref[...]
    out_ref[...] = _layer_norm(y + h1, ln2_g_ref[...], ln2_b_ref[...]).astype(out_ref.dtype)


def heads_logits_kernel(x_ref, wh_ref, bh_ref, wp_ref, bp_ref,
                        lh_ref, lp_ref, m_ref, l_ref, m_sc, l_sc):
    """Pass 1 of the heads: class-tiled hanzi logits + online softmax stats.

    Grid = (row_tiles, class_tiles) with the class axis innermost/arbitrary.
    Emits lh (bf16), lp (bf16, written at class step 0), and per-row running
    softmax stats (max m, sum-of-exp l) whose final values land in m/l outputs.
    Lane-padded bias columns carry -1e30 so they get zero softmax mass.
    """
    c = pl.program_id(1)
    xb = x_ref[...]                                              # bf16 [tr, H]
    lh = jnp.dot(xb, wh_ref[...], preferred_element_type=jnp.float32) + bh_ref[...]
    lh_ref[...] = lh.astype(lh_ref.dtype)

    @pl.when(c == 0)
    def _():
        m_sc[...] = jnp.full_like(m_sc, -jnp.inf)
        l_sc[...] = jnp.zeros_like(l_sc)
        lp = (jnp.dot(xb, wp_ref[...], preferred_element_type=jnp.float32)
              + bp_ref[...])
        lp_ref[...] = lp.astype(lp_ref.dtype)

    m_prev = m_sc[...]
    m_new = jnp.maximum(m_prev, jnp.max(lh, axis=-1, keepdims=True))
    l_new = (l_sc[...] * jnp.exp(m_prev - m_new)
             + jnp.sum(jnp.exp(lh - m_new), axis=-1, keepdims=True))
    m_sc[...] = m_new
    l_sc[...] = l_new
    m_ref[...] = jnp.broadcast_to(m_new, m_ref.shape)
    l_ref[...] = jnp.broadcast_to(l_new, l_ref.shape)


def heads_fusion_kernel(lh_ref, m_ref, l_ref, lp_ref, zipy_ref, pf_ref, pp_sc):
    """Pass 2 of the heads: prob_fusion = (softmax(lp) @ zipy^T) * softmax(lh).

    Class-tiled like pass 1.  pp = softmax(lp) is computed once per row tile
    (class step 0) into a bf16 scratch; softmax(lh) is reconstructed per class
    tile from the streamed lh block and the global (m, l) stats from pass 1.
    """
    c = pl.program_id(1)

    @pl.when(c == 0)
    def _():
        lp = lp_ref[...].astype(jnp.float32)
        mm = jnp.max(lp, axis=-1, keepdims=True)
        e = jnp.exp(lp - mm)
        pp_sc[...] = (e / jnp.sum(e, axis=-1, keepdims=True)).astype(pp_sc.dtype)

    m = m_ref[...][:, 0:1]
    l = l_ref[...][:, 0:1]
    ph = jnp.exp(lh_ref[...].astype(jnp.float32) - m) / l
    fu = jnp.dot(pp_sc[...], zipy_ref[...], preferred_element_type=jnp.float32)
    pf_ref[...] = (fu * ph).astype(pf_ref.dtype)


# ------------------------------ wrapper (glue) --------------------------------
def gru_last_hidden(x_tnd, gru_params, hidden_size, vmem_limit):
    wih, whh, bih, bhh = gru_params
    T, N, D = x_tnd.shape
    H3 = 3 * hidden_size
    # Per-row VMEM of the hoisted bf16 gate projection + double-buffered x tile
    # + recurrent state / gate temporaries -> cap the row tile by budget.
    bytes_per_row = T * H3 * 2 + 2 * T * D * 4 + hidden_size * 4 + 6 * H3 * 4
    tn = _pick_row_tile(N, bytes_per_row=bytes_per_row, budget=vmem_limit // 4)
    return pl.pallas_call(
        gru_last_hidden_kernel,
        out_shape=jax.ShapeDtypeStruct((N, hidden_size), jnp.float32),
        grid=(N // tn,),
        in_specs=[
            pl.BlockSpec((T, tn, D), lambda i: (0, i, 0)),
            _const_spec((D, H3)),
            _const_spec((hidden_size, H3)),
            _const_spec((1, H3)),
            _const_spec((1, H3)),
        ],
        out_specs=pl.BlockSpec((tn, hidden_size), lambda i: (i, 0)),
        compiler_params=_cparams(("parallel",), vmem_limit),
    )(x_tnd, wih, whh, bih, bhh)


def bert_plome_forward(params, cfg, input_ids, pinyin_ids, stroke_ids, attention_mask):
    B, S = input_ids.shape
    H = cfg['hidden']
    I = cfg['intermediate']
    C = cfg['num_class']
    C_pad = params['c_pad']
    PY_PAD = params['py_pad']
    vmem_limit = _vmem_limit_bytes()

    # --- pinyin / stroke sequences -> GRU final hidden states -------------------
    flat_py = pinyin_ids.reshape(-1)                          # [B*S]
    flat_sk = stroke_ids.reshape(-1)
    py_emb = params['py_ebd'][params['pyid2seq'][flat_py]]    # [B*S, PYLEN, PYDIM]
    sk_emb = params['sk_ebd'][params['skid2seq'][flat_sk]]    # [B*S, SKLEN, PYDIM]
    h_py = gru_last_hidden(jnp.transpose(py_emb, (1, 0, 2)), params['gru_py'], H, vmem_limit)
    h_sk = gru_last_hidden(jnp.transpose(sk_emb, (1, 0, 2)), params['gru_sk'], H, vmem_limit)
    py_sk_py = h_py.reshape(B, S, H)
    py_sk_sk = h_sk.reshape(B, S, H)

    # --- BERT embeddings (word + pos + token_type[0] + py_sk), LayerNorm --------
    we = params['word_emb'][input_ids]                        # [B, S, H]
    pe = params['pos_emb'][:S][None]                          # [1, S, H]
    te = params['tok_emb'][0][None, None]                     # [1, 1, H]
    token_in = pl.BlockSpec((None, S, H), lambda b: (b, 0, 0))
    token_out = pl.BlockSpec((None, S, H), lambda b: (b, 0, 0))

    x = pl.pallas_call(
        embed_ln_kernel,
        out_shape=jax.ShapeDtypeStruct((B, S, H), jnp.bfloat16),   # bf16 activations
        grid=(B,),
        in_specs=[token_in,
                  _const_spec((None, S, H)),
                  _const_spec((None, 1, H)),
                  token_in, token_in,
                  _const_spec((1, H)), _const_spec((1, H))],
        out_specs=token_out,
        compiler_params=_cparams(("parallel",), vmem_limit),
    )(we, pe, te, py_sk_py, py_sk_sk, params['emb_ln_g'], params['emb_ln_b'])

    # HF-style extended additive mask: (1 - mask) * -10000 broadcast over heads/q.
    amask = (1.0 - attention_mask.astype(jnp.float32))[:, None, :] * -10000.0  # [B,1,S]

    # --- encoder: one fused attention+FFN pallas_call per layer -----------------
    # TODO(synk): v7x query-row tiling (grid beyond (B,)) not implemented.
    layer_fn = pl.pallas_call(
        functools.partial(encoder_layer_kernel, num_heads=cfg['num_heads']),
        out_shape=jax.ShapeDtypeStruct((B, S, H), jnp.bfloat16),
        grid=(B,),
        in_specs=[
            token_in,
            pl.BlockSpec((None, 1, S), lambda b: (b, 0, 0)),
            _const_spec((H, H)), _const_spec((1, H)),
            _const_spec((H, H)), _const_spec((1, H)),
            _const_spec((H, H)), _const_spec((1, H)),
            _const_spec((H, H)), _const_spec((1, H)),
            _const_spec((1, H)), _const_spec((1, H)),
            _const_spec((H, I)), _const_spec((1, I)),
            _const_spec((I, H)), _const_spec((1, H)),
            _const_spec((1, H)), _const_spec((1, H)),
        ],
        out_specs=token_out,
        scratch_shapes=[pltpu.VMEM((S, H), jnp.float32)],     # per-head context
        compiler_params=_cparams(("parallel",), vmem_limit),
    )
    for layer in params['layers']:
        x = layer_fn(x, amask,
                     layer['wq'], layer['bq'], layer['wk'], layer['bk'],
                     layer['wv'], layer['bv'], layer['wo'], layer['bo'],
                     layer['ln1_g'], layer['ln1_b'],
                     layer['w1'], layer['b1'], layer['w2'], layer['b2'],
                     layer['ln2_g'], layer['ln2_b'])

    # nn.Dropout is identity at inference (is_training=False path).

    # --- heads + softmax fusion: class-tiled, two passes, bf16 HBM traffic -------
    rows = B * S
    x2 = x.reshape(rows, H)                                    # bf16
    row_cap = 512 if vmem_limit < 64 * 2**20 else 1024
    tr = _pick_row_tile(rows, cap=row_cap)
    tc = _pick_class_tile(C_pad, H, PY_PAD, tr, budget=vmem_limit // 2)
    heads_cp = _cparams(("parallel", "arbitrary"), vmem_limit)

    lh_pad, lp_pad, m_rows, l_rows = pl.pallas_call(
        heads_logits_kernel,
        out_shape=(jax.ShapeDtypeStruct((rows, C_pad), jnp.bfloat16),
                   jax.ShapeDtypeStruct((rows, PY_PAD), jnp.bfloat16),
                   jax.ShapeDtypeStruct((rows, 128), jnp.float32),
                   jax.ShapeDtypeStruct((rows, 128), jnp.float32)),
        grid=(rows // tr, C_pad // tc),
        in_specs=[
            pl.BlockSpec((tr, H), lambda i, c: (i, 0)),
            pl.BlockSpec((H, tc), lambda i, c: (0, c)),        # streamed wh tile
            pl.BlockSpec((1, tc), lambda i, c: (0, c)),
            _const_spec((H, PY_PAD)),
            _const_spec((1, PY_PAD)),
        ],
        out_specs=(pl.BlockSpec((tr, tc), lambda i, c: (i, c)),
                   pl.BlockSpec((tr, PY_PAD), lambda i, c: (i, 0)),
                   pl.BlockSpec((tr, 128), lambda i, c: (i, 0)),
                   pl.BlockSpec((tr, 128), lambda i, c: (i, 0))),
        scratch_shapes=[pltpu.VMEM((tr, 1), jnp.float32),
                        pltpu.VMEM((tr, 1), jnp.float32)],
        compiler_params=heads_cp,
    )(x2, params['wh'], params['bh'], params['wp'], params['bp'])

    pf_pad = pl.pallas_call(
        heads_fusion_kernel,
        out_shape=jax.ShapeDtypeStruct((rows, C_pad), jnp.bfloat16),
        grid=(rows // tr, C_pad // tc),
        in_specs=[
            pl.BlockSpec((tr, tc), lambda i, c: (i, c)),
            pl.BlockSpec((tr, 128), lambda i, c: (i, 0)),
            pl.BlockSpec((tr, 128), lambda i, c: (i, 0)),
            pl.BlockSpec((tr, PY_PAD), lambda i, c: (i, 0)),
            pl.BlockSpec((PY_PAD, tc), lambda i, c: (0, c)),   # streamed zipy tile
        ],
        out_specs=pl.BlockSpec((tr, tc), lambda i, c: (i, c)),
        scratch_shapes=[pltpu.VMEM((tr, PY_PAD), jnp.bfloat16)],
        compiler_params=heads_cp,
    )(lh_pad, m_rows, l_rows, lp_pad, params['zipy_t'])

    lh = lh_pad[:, :C].astype(jnp.float32).reshape(B, S, C)
    lp = lp_pad[:, :430].astype(jnp.float32).reshape(B, S, 430)
    pf = pf_pad[:, :C].astype(jnp.float32).reshape(B, S, C)
    return {'logits_hanzi': lh, 'logits_pinyin': lp, 'prob_fusion': pf}


# ------------------------------ deterministic init -----------------------------
def init_params(key, cfg):
    H = cfg['hidden']
    PYDIM = cfg['py_dim']
    V = cfg['vocab']
    C = cfg['num_class']
    I = cfg['intermediate']
    C_pad = _round_up(C, 128)
    PY_PAD = _round_up(430, 128)          # 512
    keys = iter(jax.random.split(key, 64))
    bf16 = jnp.bfloat16

    def nrm(shape, dtype=jnp.float32, scale=0.02):
        return (scale * jax.random.normal(next(keys), shape, jnp.float32)).astype(dtype)

    def gru(in_dim):
        # (W_ih^T [D,3H], W_hh^T [H,3H], b_ih [1,3H], b_hh [1,3H]) — torch gate order (r,z,n)
        return (nrm((in_dim, 3 * H), bf16), nrm((H, 3 * H), bf16),
                nrm((1, 3 * H)), nrm((1, 3 * H)))

    layers = []
    for _ in range(cfg['num_layers']):
        layers.append(dict(
            wq=nrm((H, H), bf16), bq=jnp.zeros((1, H), jnp.float32),
            wk=nrm((H, H), bf16), bk=jnp.zeros((1, H), jnp.float32),
            wv=nrm((H, H), bf16), bv=jnp.zeros((1, H), jnp.float32),
            wo=nrm((H, H), bf16), bo=jnp.zeros((1, H), jnp.float32),
            ln1_g=jnp.ones((1, H), jnp.float32), ln1_b=jnp.zeros((1, H), jnp.float32),
            w1=nrm((H, I), bf16), b1=jnp.zeros((1, I), jnp.float32),
            w2=nrm((I, H), bf16), b2=jnp.zeros((1, H), jnp.float32),
            ln2_g=jnp.ones((1, H), jnp.float32), ln2_b=jnp.zeros((1, H), jnp.float32),
        ))

    # Head weights, lane-padded (430 -> 512, num_class -> multiple of 128).
    # Padded bias columns get -1e30 so softmax assigns them exactly zero mass.
    wh = nrm((H, C), bf16)
    bh = jnp.zeros((1, C), jnp.float32)
    wp = nrm((H, 430), bf16)
    bp = jnp.zeros((1, 430), jnp.float32)
    zipy = jax.random.uniform(next(keys), (430, C), jnp.float32)   # pre-transposed zi_py_matrix

    wh_pad = jnp.zeros((H, C_pad), bf16).at[:, :C].set(wh)
    bh_pad = jnp.full((1, C_pad), NEG_INF, jnp.float32).at[:, :C].set(bh)
    wp_pad = jnp.zeros((H, PY_PAD), bf16).at[:, :430].set(wp)
    bp_pad = jnp.full((1, PY_PAD), NEG_INF, jnp.float32).at[:, :430].set(bp)
    zipy_pad = jnp.zeros((PY_PAD, C_pad), bf16).at[:430, :C].set(zipy.astype(bf16))

    return dict(
        c_pad=C_pad, py_pad=PY_PAD,
        pyid2seq=jax.random.randint(next(keys), (cfg['num_py_ids'], cfg['pylen']), 0, 30),
        skid2seq=jax.random.randint(next(keys), (cfg['num_sk_ids'], cfg['sklen']), 0, 7),
        py_ebd=nrm((30, PYDIM)),
        sk_ebd=nrm((7, PYDIM)),
        gru_py=gru(PYDIM),
        gru_sk=gru(PYDIM),
        word_emb=nrm((V, H)),
        pos_emb=nrm((cfg['max_sen_len'], H)),
        tok_emb=nrm((2, H)),
        emb_ln_g=jnp.ones((1, H), jnp.float32),
        emb_ln_b=jnp.zeros((1, H), jnp.float32),
        layers=layers,
        wh=wh_pad, bh=bh_pad, wp=wp_pad, bp=bp_pad, zipy_t=zipy_pad,
    )


if __name__ == "__main__":
    cfg = dict(batch=2, max_sen_len=8, hidden=32, num_heads=2, intermediate=64,
               vocab=100, num_class=16, py_dim=8, pylen=4, sklen=10,
               num_py_ids=20, num_sk_ids=15, num_layers=2)
    key = jax.random.PRNGKey(0)
    pkey, k1, k2, k3 = jax.random.split(key, 4)
    params = init_params(pkey, cfg)

    B, S = cfg['batch'], cfg['max_sen_len']
    input_ids = jax.random.randint(k1, (B, S), 0, cfg['vocab'])
    pinyin_ids = jax.random.randint(k2, (B, S), 0, cfg['num_py_ids'])
    stroke_ids = jax.random.randint(k3, (B, S), 0, cfg['num_sk_ids'])
    attention_mask = jnp.ones((B, S), jnp.int32).at[:, -2:].set(0)  # last 2 tokens padded

    out = bert_plome_forward(params, cfg, input_ids, pinyin_ids, stroke_ids, attention_mask)
    jax.block_until_ready(out)

    assert out['logits_hanzi'].shape == (B, S, cfg['num_class'])
    assert out['logits_pinyin'].shape == (B, S, 430)
    assert out['prob_fusion'].shape == (B, S, cfg['num_class'])
    assert bool(jnp.all(jnp.isfinite(out['prob_fusion'])))
    print("KERNEL_OK")
</pallas_src>

<mosaic_0001>
module attributes {stable_mosaic.version = 11 : i64} {
  func.func @gru_last_hidden_kernel(%arg0: i32, %arg1: memref<4x8x8xf32, #tpu.memory_space<vmem>>, %arg2: memref<8x96xbf16, #tpu.memory_space<vmem>>, %arg3: memref<32x96xbf16, #tpu.memory_space<vmem>>, %arg4: memref<1x96xf32, #tpu.memory_space<vmem>>, %arg5: memref<1x96xf32, #tpu.memory_space<vmem>>, %arg6: memref<8x32xf32, #tpu.memory_space<vmem>>) attributes {dimension_semantics = [#tpu.dimension_semantics<parallel>], iteration_bounds = array<i64: 2>, scalar_prefetch = 0 : i64, scratch_operands = 0 : i64, tpu.core_type = #tpu.core_type<tc>, window_params = [{transform_indices = @transform_0, window_bounds = array<i64: 4, 8, 8>}, {pipeline_mode = #tpu.pipeline_mode<synchronous>, transform_indices = @transform_1, window_bounds = array<i64: 8, 96>}, {pipeline_mode = #tpu.pipeline_mode<synchronous>, transform_indices = @transform_2, window_bounds = array<i64: 32, 96>}, {pipeline_mode = #tpu.pipeline_mode<synchronous>, transform_indices = @transform_3, window_bounds = array<i64: 1, 96>}, {pipeline_mode = #tpu.pipeline_mode<synchronous>, transform_indices = @transform_4, window_bounds = array<i64: 1, 96>}, {transform_indices = @transform_5, window_bounds = array<i64: 8, 32>}]} {
    %c0 = arith.constant 0 : index
    %c0_0 = arith.constant 0 : index
    %0 = vector.load %arg3[%c0, %c0_0] : memref<32x96xbf16, #tpu.memory_space<vmem>>, vector<32x96xbf16>
    %c0_1 = arith.constant 0 : index
    %c0_2 = arith.constant 0 : index
    %1 = vector.load %arg4[%c0_1, %c0_2] : memref<1x96xf32, #tpu.memory_space<vmem>>, vector<1x96xf32>
    %c0_3 = arith.constant 0 : index
    %c0_4 = arith.constant 0 : index
    %2 = vector.load %arg5[%c0_3, %c0_4] : memref<1x96xf32, #tpu.memory_space<vmem>>, vector<1x96xf32>
    %c0_5 = arith.constant 0 : index
    %c0_6 = arith.constant 0 : index
    %c0_7 = arith.constant 0 : index
    %3 = vector.load %arg1[%c0_5, %c0_6, %c0_7] : memref<4x8x8xf32, #tpu.memory_space<vmem>>, vector<4x8x8xf32>
    %4 = arith.truncf %3 : vector<4x8x8xf32> to vector<4x8x8xbf16>
    %5 = vector.shape_cast %4 : vector<4x8x8xbf16> to vector<32x8xbf16>
    %c0_8 = arith.constant 0 : index
    %c0_9 = arith.constant 0 : index
    %6 = vector.load %arg2[%c0_8, %c0_9] : memref<8x96xbf16, #tpu.memory_space<vmem>>, vector<8x96xbf16>
    %cst = arith.constant dense<0.000000e+00> : vector<32x96xf32>
    %7 = tpu.matmul %5, %6, %cst {dimension_numbers = #tpu.dot_dimension_numbers<[1], [0], [0], [1], [0, 0, 1, 1], [], []>} : vector<32x8xbf16>, vector<8x96xbf16>, vector<32x96xf32> -> vector<32x96xf32>
    %8 = arith.truncf %7 : vector<32x96xf32> to vector<32x96xbf16>
    %9 = vector.shape_cast %8 : vector<32x96xbf16> to vector<4x8x96xbf16>
    %cst_10 = arith.constant 0.000000e+00 : f32
    %10 = vector.broadcast %cst_10 : f32 to vector<8x32xf32>
    %11 = vector.extract_strided_slice %9 {offsets = [0, 0, 0], sizes = [1, 8, 96], strides = [1, 1, 1]} : vector<4x8x96xbf16> to vector<1x8x96xbf16>
    %12 = vector.shape_cast %11 : vector<1x8x96xbf16> to vector<8x96xbf16>
    %13 = arith.extf %12 : vector<8x96xbf16> to vector<8x96xf32>
    %14 = vector.broadcast %1 : vector<1x96xf32> to vector<8x96xf32>
    %15 = arith.addf %13, %14 : vector<8x96xf32>
    %16 = arith.truncf %10 : vector<8x32xf32> to vector<8x32xbf16>
    %cst_11 = arith.constant dense<0.000000e+00> : vector<8x96xf32>
    %17 = tpu.matmul %16, %0, %cst_11 {dimension_numbers = #tpu.dot_dimension_numbers<[1], [0], [0], [1], [0, 0, 1, 1], [], []>} : vector<8x32xbf16>, vector<32x96xbf16>, vector<8x96xf32> -> vector<8x96xf32>
    %18 = vector.broadcast %2 : vector<1x96xf32> to vector<8x96xf32>
    %19 = arith.addf %17, %18 : vector<8x96xf32>
    %20 = vector.extract_strided_slice %15 {offsets = [0, 0], sizes = [8, 32], strides = [1, 1]} : vector<8x96xf32> to vector<8x32xf32>
    %21 = vector.extract_strided_slice %19 {offsets = [0, 0], sizes = [8, 32], strides = [1, 1]} : vector<8x96xf32> to vector<8x32xf32>
    %22 = arith.addf %20, %21 : vector<8x32xf32>
    %23 = arith.negf %22 : vector<8x32xf32>
    %24 = math.exp %23 : vector<8x32xf32>
    %cst_12 = arith.constant 1.000000e+00 : f32
    %25 = vector.broadcast %cst_12 : f32 to vector<8x32xf32>
    %26 = arith.addf %25, %24 : vector<8x32xf32>
    %27 = arith.divf %25, %26 : vector<8x32xf32>
    %28 = vector.extract_strided_slice %15 {offsets = [0, 32], sizes = [8, 32], strides = [1, 1]} : vector<8x96xf32> to vector<8x32xf32>
    %29 = vector.extract_strided_slice %19 {offsets = [0, 32], sizes = [8, 32], strides = [1, 1]} : vector<8x96xf32> to vector<8x32xf32>
    %30 = arith.addf %28, %29 : vector<8x32xf32>
    %31 = arith.negf %30 : vector<8x32xf32>
    %32 = math.exp %31 : vector<8x32xf32>
    %cst_13 = arith.constant 1.000000e+00 : f32
    %33 = vector.broadcast %cst_13 : f32 to vector<8x32xf32>
    %34 = arith.addf %33, %32 : vector<8x32xf32>
    %35 = arith.divf %33, %34 : vector<8x32xf32>
    %36 = vector.extract_strided_slice %15 {offsets = [0, 64], sizes = [8, 32], strides = [1, 1]} : vector<8x96xf32> to vector<8x32xf32>
    %37 = vector.extract_strided_slice %19 {offsets = [0, 64], sizes = [8, 32], strides = [1, 1]} : vector<8x96xf32> to vector<8x32xf32>
    %38 = arith.mulf %27, %37 : vector<8x32xf32>
    %39 = arith.addf %36, %38 : vector<8x32xf32>
    %40 = math.tanh %39 : vector<8x32xf32>
    %cst_14 = arith.constant 1.000000e+00 : f32
    %41 = vector.broadcast %cst_14 : f32 to vector<8x32xf32>
    %42 = arith.subf %41, %35 : vector<8x32xf32>
    %43 = arith.mulf %42, %40 : vector<8x32xf32>
    %44 = arith.mulf %35, %10 : vector<8x32xf32>
    %45 = arith.addf %43, %44 : vector<8x32xf32>
    %46 = vector.extract_strided_slice %9 {offsets = [1, 0, 0], sizes = [1, 8, 96], strides = [1, 1, 1]} : vector<4x8x96xbf16> to vector<1x8x96xbf16>
    %47 = vector.shape_cast %46 : vector<1x8x96xbf16> to vector<8x96xbf16>
    %48 = arith.extf %47 : vector<8x96xbf16> to vector<8x96xf32>
    %49 = vector.broadcast %1 : vector<1x96xf32> to vector<8x96xf32>
    %50 = arith.addf %48, %49 : vector<8x96xf32>
    %51 = arith.truncf %45 : vector<8x32xf32> to vector<8x32xbf16>
    %cst_15 = arith.constant dense<0.000000e+00> : vector<8x96xf32>
    %52 = tpu.matmul %51, %0, %cst_15 {dimension_numbers = #tpu.dot_dimension_numbers<[1], [0], [0], [1], [0, 0, 1, 1], [], []>} : vector<8x32xbf16>, vector<32x96xbf16>, vector<8x96xf32> -> vector<8x96xf32>
    %53 = vector.broadcast %2 : vector<1x96xf32> to vector<8x96xf32>
    %54 = arith.addf %52, %53 : vector<8x96xf32>
    %55 = vector.extract_strided_slice %50 {offsets = [0, 0], sizes = [8, 32], strides = [1, 1]} : vector<8x96xf32> to vector<8x32xf32>
    %56 = vector.extract_strided_slice %54 {offsets = [0, 0], sizes = [8, 32], strides = [1, 1]} : vector<8x96xf32> to vector<8x32xf32>
    %57 = arith.addf %55, %56 : vector<8x32xf32>
    %58 = arith.negf %57 : vector<8x32xf32>
    %59 = math.exp %58 : vector<8x32xf32>
    %cst_16 = arith.constant 1.000000e+00 : f32
    %60 = vector.broadcast %cst_16 : f32 to vector<8x32xf32>
    %61 = arith.addf %60, %59 : vector<8x32xf32>
    %62 = arith.divf %60, %61 : vector<8x32xf32>
    %63 = vector.extract_strided_slice %50 {offsets = [0, 32], sizes = [8, 32], strides = [1, 1]} : vector<8x96xf32> to vector<8x32xf32>
    %64 = vector.extract_strided_slice %54 {offsets = [0, 32], sizes = [8, 32], strides = [1, 1]} : vector<8x96xf32> to vector<8x32xf32>
    %65 = arith.addf %63, %64 : vector<8x32xf32>
    %66 = arith.negf %65 : vector<8x32xf32>
    %67 = math.exp %66 : vector<8x32xf32>
    %cst_17 = arith.constant 1.000000e+00 : f32
    %68 = vector.broadcast %cst_17 : f32 to vector<8x32xf32>
    %69 = arith.addf %68, %67 : vector<8x32xf32>
    %70 = arith.divf %68, %69 : vector<8x32xf32>
    %71 = vector.extract_strided_slice %50 {offsets = [0, 64], sizes = [8, 32], strides = [1, 1]} : vector<8x96xf32> to vector<8x32xf32>
    %72 = vector.extract_strided_slice %54 {offsets = [0, 64], sizes = [8, 32], strides = [1, 1]} : vector<8x96xf32> to vector<8x32xf32>
    %73 = arith.mulf %62, %72 : vector<8x32xf32>
    %74 = arith.addf %71, %73 : vector<8x32xf32>
    %75 = math.tanh %74 : vector<8x32xf32>
    %cst_18 = arith.constant 1.000000e+00 : f32
    %76 = vector.broadcast %cst_18 : f32 to vector<8x32xf32>
    %77 = arith.subf %76, %70 : vector<8x32xf32>
    %78 = arith.mulf %77, %75 : vector<8x32xf32>
    %79 = arith.mulf %70, %45 : vector<8x32xf32>
    %80 = arith.addf %78, %79 : vector<8x32xf32>
    %81 = vector.extract_strided_slice %9 {offsets = [2, 0, 0], sizes = [1, 8, 96], strides = [1, 1, 1]} : vector<4x8x96xbf16> to vector<1x8x96xbf16>
    %82 = vector.shape_cast %81 : vector<1x8x96xbf16> to vector<8x96xbf16>
    %83 = arith.extf %82 : vector<8x96xbf16> to vector<8x96xf32>
    %84 = vector.broadcast %1 : vector<1x96xf32> to vector<8x96xf32>
    %85 = arith.addf %83, %84 : vector<8x96xf32>
    %86 = arith.truncf %80 : vector<8x32xf32> to vector<8x32xbf16>
    %cst_19 = arith.constant dense<0.000000e+00> : vector<8x96xf32>
    %87 = tpu.matmul %86, %0, %cst_19 {dimension_numbers = #tpu.dot_dimension_numbers<[1], [0], [0], [1], [0, 0, 1, 1], [], []>} : vector<8x32xbf16>, vector<32x96xbf16>, vector<8x96xf32> -> vector<8x96xf32>
    %88 = vector.broadcast %2 : vector<1x96xf32> to vector<8x96xf32>
    %89 = arith.addf %87, %88 : vector<8x96xf32>
    %90 = vector.extract_strided_slice %85 {offsets = [0, 0], sizes = [8, 32], strides = [1, 1]} : vector<8x96xf32> to vector<8x32xf32>
    %91 = vector.extract_strided_slice %89 {offsets = [0, 0], sizes = [8, 32], strides = [1, 1]} : vector<8x96xf32> to vector<8x32xf32>
    %92 = arith.addf %90, %91 : vector<8x32xf32>
    %93 = arith.negf %92 : vector<8x32xf32>
    %94 = math.exp %93 : vector<8x32xf32>
    %cst_20 = arith.constant 1.000000e+00 : f32
    %95 = vector.broadcast %cst_20 : f32 to vector<8x32xf32>
    %96 = arith.addf %95, %94 : vector<8x32xf32>
    %97 = arith.divf %95, %96 : vector<8x32xf32>
    %98 = vector.extract_strided_slice %85 {offsets = [0, 32], sizes = [8, 32], strides = [1, 1]} : vector<8x96xf32> to vector<8x32xf32>
    %99 = vector.extract_strided_slice %89 {offsets = [0, 32], sizes = [8, 32], strides = [1, 1]} : vector<8x96xf32> to vector<8x32xf32>
    %100 = arith.addf %98, %99 : vector<8x32xf32>
    %101 = arith.negf %100 : vector<8x32xf32>
    %102 = math.exp %101 : vector<8x32xf32>
    %cst_21 = arith.constant 1.000000e+00 : f32
    %103 = vector.broadcast %cst_21 : f32 to vector<8x32xf32>
    %104 = arith.addf %103, %102 : vector<8x32xf32>
    %105 = arith.divf %103, %104 : vector<8x32xf32>
    %106 = vector.extract_strided_slice %85 {offsets = [0, 64], sizes = [8, 32], strides = [1, 1]} : vector<8x96xf32> to vector<8x32xf32>
    %107 = vector.extract_strided_slice %89 {offsets = [0, 64], sizes = [8, 32], strides = [1, 1]} : vector<8x96xf32> to vector<8x32xf32>
    %108 = arith.mulf %97, %107 : vector<8x32xf32>
    %109 = arith.addf %106, %108 : vector<8x32xf32>
    %110 = math.tanh %109 : vector<8x32xf32>
    %cst_22 = arith.constant 1.000000e+00 : f32
    %111 = vector.broadcast %cst_22 : f32 to vector<8x32xf32>
    %112 = arith.subf %111, %105 : vector<8x32xf32>
    %113 = arith.mulf %112, %110 : vector<8x32xf32>
    %114 = arith.mulf %105, %80 : vector<8x32xf32>
    %115 = arith.addf %113, %114 : vector<8x32xf32>
    %116 = vector.extract_strided_slice %9 {offsets = [3, 0, 0], sizes = [1, 8, 96], strides = [1, 1, 1]} : vector<4x8x96xbf16> to vector<1x8x96xbf16>
    %117 = vector.shape_cast %116 : vector<1x8x96xbf16> to vector<8x96xbf16>
    %118 = arith.extf %117 : vector<8x96xbf16> to vector<8x96xf32>
    %119 = vector.broadcast %1 : vector<1x96xf32> to vector<8x96xf32>
    %120 = arith.addf %118, %119 : vector<8x96xf32>
    %121 = arith.truncf %115 : vector<8x32xf32> to vector<8x32xbf16>
    %cst_23 = arith.constant dense<0.000000e+00> : vector<8x96xf32>
    %122 = tpu.matmul %121, %0, %cst_23 {dimension_numbers = #tpu.dot_dimension_numbers<[1], [0], [0], [1], [0, 0, 1, 1], [], []>} : vector<8x32xbf16>, vector<32x96xbf16>, vector<8x96xf32> -> vector<8x96xf32>
    %123 = vector.broadcast %2 : vector<1x96xf32> to vector<8x96xf32>
    %124 = arith.addf %122, %123 : vector<8x96xf32>
    %125 = vector.extract_strided_slice %120 {offsets = [0, 0], sizes = [8, 32], strides = [1, 1]} : vector<8x96xf32> to vector<8x32xf32>
    %126 = vector.extract_strided_slice %124 {offsets = [0, 0], sizes = [8, 32], strides = [1, 1]} : vector<8x96xf32> to vector<8x32xf32>
    %127 = arith.addf %125, %126 : vector<8x32xf32>
    %128 = arith.negf %127 : vector<8x32xf32>
    %129 = math.exp %128 : vector<8x32xf32>
    %cst_24 = arith.constant 1.000000e+00 : f32
    %130 = vector.broadcast %cst_24 : f32 to vector<8x32xf32>
    %131 = arith.addf %130, %129 : vector<8x32xf32>
    %132 = arith.divf %130, %131 : vector<8x32xf32>
    %133 = vector.extract_strided_slice %120 {offsets = [0, 32], sizes = [8, 32], strides = [1, 1]} : vector<8x96xf32> to vector<8x32xf32>
    %134 = vector.extract_strided_slice %124 {offsets = [0, 32], sizes = [8, 32], strides = [1, 1]} : vector<8x96xf32> to vector<8x32xf32>
    %135 = arith.addf %133, %134 : vector<8x32xf32>
    %136 = arith.negf %135 : vector<8x32xf32>
    %137 = math.exp %136 : vector<8x32xf32>
    %cst_25 = arith.constant 1.000000e+00 : f32
    %138 = vector.broadcast %cst_25 : f32 to vector<8x32xf32>
    %139 = arith.addf %138, %137 : vector<8x32xf32>
    %140 = arith.divf %138, %139 : vector<8x32xf32>
    %141 = vector.extract_strided_slice %120 {offsets = [0, 64], sizes = [8, 32], strides = [1, 1]} : vector<8x96xf32> to vector<8x32xf32>
    %142 = vector.extract_strided_slice %124 {offsets = [0, 64], sizes = [8, 32], strides = [1, 1]} : vector<8x96xf32> to vector<8x32xf32>
    %143 = arith.mulf %132, %142 : vector<8x32xf32>
    %144 = arith.addf %141, %143 : vector<8x32xf32>
    %145 = math.tanh %144 : vector<8x32xf32>
    %cst_26 = arith.constant 1.000000e+00 : f32
    %146 = vector.broadcast %cst_26 : f32 to vector<8x32xf32>
    %147 = arith.subf %146, %140 : vector<8x32xf32>
    %148 = arith.mulf %147, %145 : vector<8x32xf32>
    %149 = arith.mulf %140, %115 : vector<8x32xf32>
    %150 = arith.addf %148, %149 : vector<8x32xf32>
    %c0_27 = arith.constant 0 : index
    %c0_28 = arith.constant 0 : index
    %151 = vector.load %arg6[%c0_27, %c0_28] : memref<8x32xf32, #tpu.memory_space<vmem>>, vector<8x32xf32>
    tpu.vector_store %arg6[%c0_27, %c0_28], %150 {strides = array<i32>} : memref<8x32xf32, #tpu.memory_space<vmem>>, vector<8x32xf32>,
    return
  }
  func.func @transform_0(%arg0: i32) -> (i32, i32, i32) {
    %c0_i32 = arith.constant 0 : i32
    %c0_i32_0 = arith.constant 0 : i32
    %c0_i32_1 = arith.constant 0 : i32
    return %c0_i32, %arg0, %c0_i32_0 : i32, i32, i32
  }
  func.func @transform_1(%arg0: i32) -> (i32, i32) {
    %c0_i32 = arith.constant 0 : i32
    %c0_i32_0 = arith.constant 0 : i32
    %c0_i32_1 = arith.constant 0 : i32
    return %c0_i32, %c0_i32_0 : i32, i32
  }
  func.func @transform_2(%arg0: i32) -> (i32, i32) {
    %c0_i32 = arith.constant 0 : i32
    %c0_i32_0 = arith.constant 0 : i32
    %c0_i32_1 = arith.constant 0 : i32
    return %c0_i32, %c0_i32_0 : i32, i32
  }
  func.func @transform_3(%arg0: i32) -> (i32, i32) {
    %c0_i32 = arith.constant 0 : i32
    %c0_i32_0 = arith.constant 0 : i32
    %c0_i32_1 = arith.constant 0 : i32
    return %c0_i32, %c0_i32_0 : i32, i32
  }
  func.func @transform_4(%arg0: i32) -> (i32, i32) {
    %c0_i32 = arith.constant 0 : i32
    %c0_i32_0 = arith.constant 0 : i32
    %c0_i32_1 = arith.constant 0 : i32
    return %c0_i32, %c0_i32_0 : i32, i32
  }
  func.func @transform_5(%arg0: i32) -> (i32, i32) {
    %c0_i32 = arith.constant 0 : i32
    %c0_i32_0 = arith.constant 0 : i32
    return %arg0, %c0_i32 : i32, i32
  }
}

</mosaic_0001>

<bundles_post_ra>
// kernel: tpu_custom_call.1
= control target key start
LH: loop header
LB: loop body
LE: loop exit
PB: predicated region body
PF: predicated region fallthrough
CT: control target
= control target key end

     0   :  { %10 = vsyncpa [#allocation3], 0  ;;  %s1666_s0 = inlined_call_operand.hbm [shape: f32[4,16,8], index: 0, kind: input, shape index: {}]   ;;  %s1667_s1 = inlined_call_operand.hbm [shape: bf16[8,96], index: 1, kind: input, shape index: {}]   ;;  %s1668_s2 = inlined_call_operand.hbm [shape: bf16[32,96], index: 2, kind: input, shape index: {}]   ;;  %s1669_s3 = inlined_call_operand.hbm [shape: f32[1,96], index: 3, kind: input, shape index: {}]   ;;  %s1670_s4 = inlined_call_operand.hbm [shape: f32[1,96], index: 4, kind: input, shape index: {}]   ;;  %s1671_s5 = inlined_call_operand.hbm [shape: f32[16,32], index: 5, kind: output, shape index: {}]  }
   0x1   :  { %12 = vsyncpa [#allocation3 + $0x1], 0 }
   0x2   :  { %13 = vsyncpa [#allocation6], 0 }
   0x3   :  { %14 = vsyncpa [#allocation9], 0 }
   0x4   :  { %15 = vsyncpa [#allocation4], 0 }
   0x5   :  { %17 = vsyncpa [#allocation4 + $0x1], 0  ;;  %s1330_s18 = smov 0   ;;  %s1332_s19 = smov 0  }
   0x6   :  { %s1334_s20 = smov 0   ;;  %s1336_s21 = smov 0  }
   0x7 LB: > { %s1351_s22 = sadd.s32 4294967295, %s1282_s21   ;;  %s844_s23 = sadd.s32 4294967294, %s1282_s21   ;;  %s1282_s21 = sphi %s1336_s21, %s1694_s21   ;;  %s1278_s20 = sphi %s1334_s20, %s1693_s20   ;;  %s1274_s19 = sphi %s1332_s19, %s1692_s19   ;;  %s1270_s18 = sphi %s1330_s18, %s1691_s18  }
   0x8   : > { %p43_p0 = scmp.ne.s32.totalorder %s1274_s19, %s1270_s18  ;;  %p1672_p1 = scmp.eq.s32.totalorder %s1351_s22, 0 }
   0x9   : > { %p157_p3 = scmp.eq.s32.totalorder %s844_s23, 1  ;;  %p845_p5 = scmp.ge.s32.totalorder %s1282_s21, 1 }
   0xa   : > { %p1360_p4 = por %p1672_p1, %p43_p0  ;;  %p164_p7 = scmp.lt.s32.totalorder %s1282_s21, 3 }
   0xb   : > { %p1365_p6 = por %p157_p3, %p43_p0  ;;  %s1284_s27 = smov [#allocation5]  }
   0xc   : > { %s1675_s24 = scalar_select %p1360_p4, 1, 0 }
   0xd   : > { %s1676_s25 = scalar_select %p1365_p6, 1, 0 }
   0xe   : > { %p1370_p8 = pnand %p845_p5, %p164_p7  ;;  %s177_s28 = sshll.u32 %s1284_s27, 4  ;;  %s178_s28 = int_to_ptr.vmem [resolvable:$true] %s177_s28 }
   0xf   : > { %s1285_s29 = smov [#allocation8]   ;;  %s1286_s7 = smov [#allocation7]  }
  0x10   : > { %s1677_s26 = scalar_select %p1370_p8, 1, 0 }
  0x11   : > { %p963_p10 = pneg %p1370_p8  ;;  %s201_s30 = sshll.u32 %s1285_s29, 4  ;;  %s1383_s30 = int_to_ptr.vmem [resolvable:$true] %s201_s30 }
  0x12   : > { %s187_s8 = sshll.u32 %s1286_s7, 4  ;;  %s1066_s11 = scalar_lea.hbm %s1667_s1, 64  ;;  %s1385_s8 = int_to_ptr.vmem [resolvable:$true] %s187_s8 }
  0x13   : > { %p1379_p11 = pnand %p963_p10, %p1672_p1  ;;  %p1067_p12 = scmp.ne.s32.totalorder %s1667_s1, %s1066_s11 }
  0x14   : > { %p1073_p5 = scmp.lt.u32.totalorder %s1066_s11, %s1667_s1 }
  0x15   : > { %p1395_p13 = pneg %p1379_p11 }
  0x17   : > { %p1069_p0 = pnand %p1395_p13, %p1067_p12 }
  0x19   : > { %p1070_p3 = pneg %p1069_p0 }
  0x1b   : > { %p1075_p7 = pnand %p1073_p5, %p1070_p3 }
  0x1d   : > { %1078 = shalt.err (!%p1075_p7)
}
  0x1e   : > { %s1079_s17 = scalar_lea.vmem %s178_s28, 64  ;;  %p1087_p2 = scmp.lt.s32.totalorder %s178_s28, %s178_s28 }
  0x1f   : > { %p1080_p10 = scmp.ne.s32.totalorder %s178_s28, %s1079_s17  ;;  %p1088_p6 = scmp.lt.s32.totalorder %s1079_s17, %s1079_s17 }
  0x21   : > { %p1082_p9 = pnand %p1080_p10, %p1395_p13  ;;  %p1089_p4 = por %p1088_p6, %p1087_p2 }
  0x23   : > { %p1083_p1 = pneg %p1082_p9 }
  0x25   : > { %p1090_p8 = pnand %p1089_p4, %p1083_p1 }
  0x27   : > { %1093 = shalt.err (!%p1090_p8)
}
  0x28   : > { %966 = dma.hbm_to_vmem [thread:$0]  (!%p1379_p11), %s1667_s1, 64, %s178_s28, [#allocation6]  }
  0x29   : > { %s1094_s9 = scalar_lea.hbm %s1669_s3, 16 }
  0x2a   : > { %p1095_p9 = scmp.ne.s32.totalorder %s1669_s3, %s1094_s9  ;;  %p1101_p1 = scmp.lt.u32.totalorder %s1094_s9, %s1669_s3 }
  0x2c   : > { %p1097_p12 = pnand %p1095_p9, %p1395_p13 }
  0x2e   : > { %p1098_p2 = pneg %p1097_p12 }
  0x30   : > { %p1103_p4 = pnand %p1101_p1, %p1098_p2 }
  0x32   : > { %1106 = shalt.err (!%p1103_p4)
}
  0x33   : > { %s1107_s28 = scalar_lea.vmem %s1383_s30, 16  ;;  %s1114_s15 = scalar_lea.vmem %s1383_s30, 32 }
  0x34   : > { %p1108_p6 = scmp.ne.s32.totalorder %s1383_s30, %s1107_s28  ;;  %p1115_p3 = scmp.lt.s32.totalorder %s1383_s30, %s1383_s30 }
  0x35   : > { %p1116_p5 = scmp.lt.s32.totalorder %s1114_s15, %s1107_s28 }
  0x36   : > { %p1110_p8 = pnand %p1108_p6, %p1395_p13 }
  0x37   : > { %p1117_p7 = por %p1116_p5, %p1115_p3 }
  0x38   : > { %p1111_p0 = pneg %p1110_p8 }
  0x3a   : > { %p1118_p10 = pnand %p1117_p7, %p1111_p0 }
  0x3c   : > { %1121 = shalt.err (!%p1118_p10)
}
  0x3d   : > { %972 = dma.hbm_to_vmem [thread:$0]  (!%p1379_p11), %s1669_s3, 16, %s1383_s30, [#allocation9]  }
  0x3e   : > { %s1122_s29 = scalar_lea.hbm %s1668_s2, 256 }
  0x3f   : > { %p1123_p9 = scmp.ne.s32.totalorder %s1668_s2, %s1122_s29  ;;  %p1129_p1 = scmp.lt.u32.totalorder %s1122_s29, %s1668_s2 }
  0x41   : > { %p1125_p12 = pnand %p1123_p9, %p1395_p13 }
  0x43   : > { %p1126_p2 = pneg %p1125_p12 }
  0x45   : > { %p1131_p4 = pnand %p1129_p1, %p1126_p2 }
  0x47   : > { %1134 = shalt.err (!%p1131_p4)
}
  0x48   : > { %s1135_s30 = scalar_lea.vmem %s1385_s8, 256  ;;  %p1143_p3 = scmp.lt.s32.totalorder %s1385_s8, %s1385_s8 }
  0x49   : > { %p1136_p6 = scmp.ne.s32.totalorder %s1385_s8, %s1135_s30  ;;  %p1144_p5 = scmp.lt.s32.totalorder %s1135_s30, %s1135_s30 }
  0x4b   : > { %p1138_p8 = pnand %p1136_p6, %p1395_p13  ;;  %p1145_p7 = por %p1144_p5, %p1143_p3 }
  0x4d   : > { %p1139_p0 = pneg %p1138_p8 }
  0x4f   : > { %p1146_p10 = pnand %p1145_p7, %p1139_p0 }
  0x51   : > { %1149 = shalt.err (!%p1146_p10)
}
  0x52   : > { %s1287_s12 = smov 64   ;;  %s1288_s13 = smov 4  }
  0x53   : > { %969 = dma.hbm_to_vmem [thread:$0]  (!%p1379_p11), %s1668_s2, 256, %s1385_s8, [#allocation6], %s1287_s12, %s1287_s12, %s1288_s13  }
  0x54   : > { %s1289_s16 = smov [#allocation10]   ;;  %s1150_s29 = scalar_lea.hbm %s1670_s4, 16 }
  0x55   : > { %s212_s17 = sshll.u32 %s1289_s16, 4  ;;  %p1151_p9 = scmp.ne.s32.totalorder %s1670_s4, %s1150_s29  ;;  %s213_s17 = int_to_ptr.vmem [resolvable:$true] %s212_s17 }
  0x56   : > { %p1157_p1 = scmp.lt.u32.totalorder %s1150_s29, %s1670_s4 }
  0x57   : > { %p1153_p12 = pnand %p1151_p9, %p1395_p13 }
  0x59   : > { %p1154_p2 = pneg %p1153_p12 }
  0x5b   : > { %p1159_p4 = pnand %p1157_p1, %p1154_p2 }
  0x5d   : > { %1162 = shalt.err (!%p1159_p4)
}
  0x5e   : > { %s1163_s8 = scalar_lea.vmem %s213_s17, 16  ;;  %s1170_s30 = scalar_lea.vmem %s213_s17, 32 }
  0x5f   : > { %p1164_p6 = scmp.ne.s32.totalorder %s213_s17, %s1163_s8  ;;  %p1171_p3 = scmp.lt.s32.totalorder %s213_s17, %s213_s17 }
  0x60   : > { %p1172_p5 = scmp.lt.s32.totalorder %s1170_s30, %s1163_s8 }
  0x61   : > { %p1166_p8 = pnand %p1164_p6, %p1395_p13 }
  0x62   : > { %p1173_p7 = por %p1172_p5, %p1171_p3 }
  0x63   : > { %p1167_p0 = pneg %p1166_p8 }
  0x65   : > { %p1174_p10 = pnand %p1173_p7, %p1167_p0 }
  0x67   : > { %1177 = shalt.err (!%p1174_p10)
}
  0x68   : > { %975 = dma.hbm_to_vmem [thread:$0]  (!%p1379_p11), %s1670_s4, 16, %s213_s17, [#allocation9]  }
  0x69   : > { %s1477_s14 = sadd.s32 1, %s1282_s21   ;;  %s30_s28 = sadd.s32 1, %s1278_s20 }
  0x6a   : > { %s27_s6 = ssub.s32 %s1282_s21, %s1477_s14  ;;  %p37_p13 = scmp.ne.s32.totalorder %s1278_s20, %s1274_s19 }
  0x6b   : > { %p28_p9 = scmp.eq.s32.totalorder %s27_s6, 0  ;;  %p38_p12 = scmp.eq.s32.totalorder %s1282_s21, 0 }
  0x6c   : > { %p1680_p2 = scmp.eq.s32.totalorder %s1351_s22, 1  ;;  %p988_p4 = scmp.lt.s32.totalorder %s1282_s21, 2 }
  0x6d   : > { %s1493_s16 = scalar_select %p28_p9, %s1278_s20, %s30_s28  }
  0x6e   : > { %p1487_p1 = por %p1680_p2, %p37_p13  ;;  %p39_p6 = por %p38_p12, %p37_p13 }
  0x6f   : > { %s223_s23 = sand.u32 1, %s1278_s20   ;;  %s852_s17 = sshll.u32 %s1282_s21, 7 }
  0x70   : > { %s851_s27 = sshll.u32 %s223_s23, 5  ;;  %s1500_s9 = scalar_lea.hbm %s1666_s0, %s852_s17 }
  0x71   : > { %s227_s10 = scalar_lea.vmem [#allocation2], %s851_s27  ;;  %p1504_p11 = pnand %p988_p4, %p39_p6 }
  0x72   : > { %s233_s11 = sshll.u32 %s227_s10, 4  ;;  %s1508_s30 = scalar_lea.sflag [#allocation3], %s223_s23  ;;  %s1502_s11 = int_to_ptr.vmem [resolvable:$true] %s233_s11 }
  0x73   : > { %s1178_s12 = scalar_lea.hbm %s1500_s9, 512  ;;  %p1180_p0 = pneg %p1504_p11 }
  0x74   : > { %p1179_p8 = scmp.ne.s32.totalorder %s1500_s9, %s1178_s12  ;;  %s1183_s6 = scalar_lea.hbm %s1666_s0, 1024 }
  0x75   : > { %p1184_p7 = scmp.lt.u32.totalorder %s1500_s9, %s1666_s0  ;;  %p1185_p10 = scmp.lt.u32.totalorder %s1183_s6, %s1178_s12 }
  0x76   : > { %p1181_p3 = pnand %p1180_p0, %p1179_p8  ;;  %p1187_p9 = scmp.lt.u32.totalorder %s1178_s12, %s1500_s9 }
  0x77   : > { %p1186_p13 = por %p1185_p10, %p1184_p7 }
  0x78   : > { %p1182_p5 = pneg %p1181_p3 }
  0x79   : > { %p1188_p12 = por %p1187_p9, %p1186_p13 }
  0x7b   : > { %p1189_p2 = pnand %p1188_p12, %p1182_p5 }
  0x7d   : > { %1192 = shalt.err (!%p1189_p2)
}
  0x7e   : > { %s1193_s23 = scalar_lea.vmem %s1502_s11, 512  ;;  %s1290_s29 = smov [#allocation2]  }
  0x7f   : > { %p1194_p4 = scmp.ne.s32.totalorder %s1502_s11, %s1193_s23  ;;  %s1198_s7 = sshll.u32 %s1290_s29, 4  ;;  %s1199_s7 = int_to_ptr.vmem [resolvable:$false] %s1198_s7 }
  0x80   : > { %s1200_s10 = scalar_lea.vmem %s1199_s7, 1024  ;;  %p1201_p3 = scmp.lt.s32.totalorder %s1502_s11, %s1199_s7 }
  0x81   : > { %p1196_p6 = pnand %p1194_p4, %p1180_p0  ;;  %p1202_p7 = scmp.lt.s32.totalorder %s1200_s10, %s1193_s23 }
  0x83   : > { %p1197_p8 = pneg %p1196_p6  ;;  %p1203_p10 = por %p1202_p7, %p1201_p3 }
  0x85   : > { %p1204_p13 = pnand %p1203_p10, %p1197_p8 }
  0x87   : > { %1207 = shalt.err (!%p1204_p13)
}
  0x88   : > { %s1291_s12 = smov 256   ;;  %s1292_s13 = smov 128  }
  0x89   : > { %s1293_s28 = smov 8   ;;  %p1683_p0 = scmp.ne.s32.totalorder %s1677_s26, 0 }
  0x8a   : > { %979 = dma.hbm_to_vmem [thread:$0]  (!%p1504_p11), %s1500_s9, 512, %s1502_s11, %s1508_s30, %s1291_s12, %s1292_s13, %s1293_s28  }
  0x8b   : > { %245 = sbr.rel (%p1683_p0) target bundleno = 2954 (0xb8a), region = 40  ;;  %s1539_s6 = sand.u32 (!%p1683_p0), 1, %s1274_s19  }
  0x8c   : > { %s854_s27 = sshll.u32 (!%p1683_p0), %s1539_s6, 5  ;;  %s248_s17 = scalar_lea.sflag (!%p1683_p0), [#allocation3], %s1539_s6 }
  0x8d   : > { %s251_s23 = scalar_lea.vmem (!%p1683_p0), [#allocation2], %s854_s27  ;;  %p1684_p5 = scmp.ne.s32.totalorder (!%p1683_p0), %s1675_s24, 0 }
  0x92   : > { %1253 = dma.done.wait (%p1684_p5), %s248_s17, 512  }
  0x93   : > { %1255 = vsyncadd (%p1684_p5), %s248_s17, 4294966784  ;;  %p1685_p9 = scmp.eq.s32.totalorder %s1351_s22, 0 }
  0x95   : > { %1257 = dma.done.wait (%p1685_p9), [#allocation6], 320   ;;  %p1686_p11 = pmov %p1685_p9 }
  0x96   : > { %p1687_p12 = pmov %p1685_p9 }
  0x97   : > { %1259 = vsyncadd (%p1686_p11), [#allocation6], 4294966976 }
  0x98   : > { %1261 = dma.done.wait (%p1687_p12), [#allocation9], 32   ;;  %p1688_p2 = pmov %p1685_p9 }
  0x99   : > { %v1294_v0 = vmov 0.0   ;;  %vm1295_vm0 = vmmov 0   ;;  %vm327_vm1 = vcmask 1043456   ;;  %v309_v1 = vld [vmem:[#allocation5] sm:$0xf]  ;;  %v1558_v3 = vld [vmem:[#allocation7] sm:$0xff]  }
  0x9a   : > { %1263 = vsyncadd (%p1688_p2), [#allocation9], 4294967264  ;;  %910 = vmatprep.subr.bf16.mxu1 %v1294_v0  ;;  %914 = vmatprep.mubr.msk.bf16.mxu1 %vm1295_vm0, %v1294_v0  ;;  %v329_v2 = vsel %vm327_vm1, %v309_v1, 0  ;;  %v301_v4 = vld [vmem:[%s251_s23] sm:$0xff]  ;;  %v302_v5 = vld [vmem:[%s251_s23 + $0x8] sm:$0xff]  ;;  %vm320_vm2 = vcmask 64512  }
  0x9b   : > { %942 = vmatprep.subr.msk.bf16.mxu0 %vm327_vm1, %v309_v1  ;;  %v883_v6 = vpack.c.bf16 %v302_v5, %v301_v4  ;;  %v303_v7 = vld [vmem:[%s251_s23 + $0x10] sm:$0xff]  ;;  %v304_v8 = vld [vmem:[%s251_s23 + $0x18] sm:$0xff]  ;;  %911 = vmatpush3.bf16.msra.mxu1 %v1558_v3  ;;  %v1296_v11 = vmov 0   ;;  %s1297_s24 = smov 64   ;;  %s1298_s26 = smov 96   ;;  %vm422_vm3 = vcmask 261120  }
  0x9c   : > { %905 = vmatpush3.bf16.msra.mxu0 %v329_v2  ;;  %v884_v9 = vpack.c.bf16 %v304_v8, %v303_v7  ;;  %v1561_v10 = vld [vmem:[#allocation7 + $0x8] sm:$0xff]   ;;  %912 = vmatprep.subr.bf16.mxu1 %v1294_v0  ;;  %v1578_v17 = vld [vmem:[#allocation10] ss:$0 sm:$0xff]  ;;  %v868_v20 = vld [vmem:[#allocation8] ss:$0 sm:$0xff]  ;;  %s859_s9 = sshll.u32 %s1539_s6, 3 }
  0x9d   : > { %918 = vmatprep.subr.bf16.mxu0 %v1294_v0  ;;  %906 = vmatprep.mubr.msk.bf16.mxu0 %vm320_vm2, %v883_v6  ;;  %s880_s11 = sshll.u32 %s1351_s22, 7  ;;  %s293_s8 = scalar_lea.vmem [#allocation11], %s859_s9 }
  0x9e   : > { %s736_s30 = sshll.u32 %s293_s8, 4  ;;  %s1621_s10 = scalar_lea.hbm %s1671_s5, %s880_s11  ;;  %s1623_s30 = int_to_ptr.vmem [resolvable:$true] %s736_s30 }
  0x9f   : > { %907 = vmatmul.mubr.msk.bf16.vlgmr.msra.gmra.mrb[0].mxu0 %vm320_vm2, %v884_v9  ;;  %913 = vmatpush3.bf16.msra.mxu1 %v1561_v10  ;;  %s723_s12 = scalar_lea.sflag [#allocation4], %s1539_s6  ;;  %s1208_s13 = scalar_lea.vmem %s1623_s30, 128 }
  0xa0   : > { %919 = vmatpush3.bf16.msra.mxu0 %v1558_v3  ;;  %922 = vmatprep.mubr.msk.bf16.mxu0 %vm1295_vm0, %v1294_v0  ;;  %p1209_p4 = scmp.ne.s32.totalorder %s1623_s30, %s1208_s13  ;;  %s1299_s22 = smov [#allocation11]  }
  0xa1   : > { %920 = vmatprep.subr.bf16.mxu0 %v1294_v0  ;;  %926 = vmatprep.subr.bf16.mxu1 %v1294_v0  ;;  %s1212_s28 = sshll.u32 %s1299_s22, 4  ;;  %s1213_s28 = int_to_ptr.vmem [resolvable:$false] %s1212_s28 }
  0xa2   : > { %915 = vmatmul.mubr.bf16.vlgmr.msra.gmra.mrb[0].mxu1 %v1296_v11  ;;  %p1210_p6 = pnand %p1209_p4, %p1487_p1  ;;  %s1214_s27 = scalar_lea.vmem %s1213_s28, 256 }
  0xa3   : > { %927 = vmatpush3.bf16.msra.mxu1 %v1558_v3  ;;  %930 = vmatprep.mubr.msk.bf16.mxu1 %vm1295_vm0, %v1294_v0  ;;  %p1215_p3 = scmp.lt.s32.totalorder %s1623_s30, %s1213_s28  ;;  %p1216_p7 = scmp.lt.s32.totalorder %s1214_s27, %s1208_s13 }
  0xa4   : > { %921 = vmatpush3.bf16.msra.mxu0 %v1561_v10  ;;  %928 = vmatprep.subr.bf16.mxu1 %v1294_v0  ;;  %p1211_p8 = pneg %p1210_p6 }
  0xa5   : > { %934 = vmatprep.subr.bf16.mxu0 %v1294_v0  ;;  %p1217_p10 = por %p1216_p7, %p1215_p3 }
  0xa7   : > { %929 = vmatpush3.bf16.msra.mxu1 %v1561_v10  ;;  %p1218_p13 = pnand %p1217_p10, %p1211_p8 }
 0x172   : > { %v908_v12 = vpop.f32.mrb[0].mxu0 }
 0x173   : > { %v887_v13 = vpack.c.bf16 %v908_v12, %v908_v12  ;;  %v365_v14 = vpop.f32.mrb[1].mxu0 }
 0x174   : > { %v909_v15 = vpop.f32.mrb[2].mxu0  ;;  %v885_v32 = vpack.c.bf16 %v365_v14, %v365_v14 }
 0x175   : > { %v567_v16 = vunpack.c.l.bf16 %v887_v13  ;;  %v888_v18 = vpack.c.bf16 %v909_v15, %v909_v15  ;;  %v368_v19 = vpop.f32.mrb[3].mxu0  ;;  %v460_v23 = vpop.f32.mrb[0].mxu1 }
 0x176   : > { %v886_v21 = vpack.c.bf16 %v368_v19, %v368_v19  ;;  %v461_v25 = vadd.f32 %v1578_v17, %v460_v23  ;;  %v916_v26 = vpop.f32.mrb[1].mxu1  ;;  %v396_v33 = vunpack.c.l.bf16 %v885_v32 }
 0x177   : > { %v1580_v22 = vadd.f32 %v868_v20, %v567_v16  ;;  %v642_v24 = vunpack.c.l.bf16 %v888_v18  ;;  %v463_v28 = vpop.f32.mrb[2].mxu1 }
 0x178   : > { %v492_v27 = vunpack.c.l.bf16 %v886_v21  ;;  %474 = vrot.lane.b32.xlu0 %v461_v25, %s1297_s24  ;;  %v917_v30 = vpop.f32.mrb[3].mxu1  ;;  %v403_v34 = vadd.f32 %v868_v20, %v396_v33 }
 0x179   : > { %v1583_v29 = vadd.f32 %v868_v20, %v642_v24 }
 0x17a   : > { %v493_v31 = vadd.f32 %v868_v20, %v492_v27  ;;  %v466_v35 = vadd.f32 %v461_v25, %v403_v34 }
 0x17c   : > { %v872_v36 = vmul.f32 -1.442695, %v466_v35 }
 0x17e   : > { %1042 = vpow2.f32 %v872_v36 }
 0x188   : > { %v1043_v37 = vpop.eup %1042 }
 0x189   : > { %v470_v38 = vadd.f32 1.0, %v1043_v37 }
 0x18b   : > { %1044 = vrcp.f32 %v470_v38 }
 0x195   : > { %v1045_v39 = vpop.eup %1044 }
 0x196   : > { %v484_v45 = vsub.f32 1.0, %v1045_v39  ;;  %v490_v47 = vmul.f32 0.0, %v1045_v39 }
 0x1ea   : > { %v475_v40 = vpop.permute.xlu0 %474 }
 0x1eb   : > { %v477_v41 = vmul.f32 %v1045_v39, %v475_v40 }
 0x1ed   : > { %479 = vrot.lane.b32.xlu0 %v477_v41, %s1297_s24 }
 0x25f   : > { %v480_v42 = vpop.permute.xlu0 %479 }
 0x260   : > { %v482_v43 = vadd.f32 %v480_v42, %v403_v34 }
 0x262   : > { %1046 = vtanh.f32 %v482_v43 }
 0x26c   : > { %v1047_v44 = vpop.eup %1046 }
 0x26d   : > { %486 = vrot.lane.b32.xlu1 %v1047_v44, %s1298_s26 }
 0x2df   : > { %v487_v46 = vpop.permute.xlu1 %486 }
 0x2e0   : > { %v489_v48 = vmul.f32 %v487_v46, %v484_v45 }
 0x2e2   : > { %v491_v49 = vadd.f32 %v490_v47, %v489_v48 }
 0x2e4   : > { %v494_v50 = vpack.c.bf16 %v491_v49, %v491_v49 }
 0x2e6   : > { %496 = vrot.lane.b32.xlu1 %v494_v50, %s1298_s26 }
 0x358   : > { %v497_v51 = vpop.permute.xlu1 %496 }
 0x359   : > { %923 = vmatmul.mubr.msk.bf16.vlgmr.msra.gmra.mrb[4].mxu0 %vm422_vm3, %v497_v51 }
 0x35a   : > { %935 = vmatpush3.bf16.msra.mxu0 %v1558_v3  ;;  %938 = vmatprep.mubr.msk.bf16.mxu0 %vm1295_vm0, %v1294_v0 }
 0x35b   : > { %936 = vmatprep.subr.bf16.mxu0 %v1294_v0 }
 0x35e   : > { %937 = vmatpush3.bf16.msra.mxu0 %v1561_v10 }
 0x42c   : > { %v535_v52 = vpop.f32.mrb[4].mxu0 }
 0x42d   : > { %v536_v53 = vadd.f32 %v1578_v17, %v535_v52  ;;  %v924_v54 = vpop.f32.mrb[5].mxu0 }
 0x42e   : > { %v538_v55 = vpop.f32.mrb[6].mxu0 }
 0x42f   : > { %549 = vrot.lane.b32.xlu0 %v536_v53, %s1297_s24  ;;  %v925_v56 = vpop.f32.mrb[7].mxu0  ;;  %v541_v57 = vadd.f32 %v536_v53, %v493_v31 }
 0x431   : > { %v874_v58 = vmul.f32 -1.442695, %v541_v57 }
 0x433   : > { %1048 = vpow2.f32 %v874_v58 }
 0x43d   : > { %v1049_v59 = vpop.eup %1048 }
 0x43e   : > { %v545_v60 = vadd.f32 1.0, %v1049_v59 }
 0x440   : > { %1050 = vrcp.f32 %v545_v60 }
 0x44a   : > { %v1051_v61 = vpop.eup %1050 }
 0x44b   : > { %v559_v3 = vsub.f32 1.0, %v1051_v61  ;;  %v565_v5 = vmul.f32 %v1051_v61, %v491_v49 }
 0x4a1   : > { %v550_v62 = vpop.permute.xlu0 %549 }
 0x4a2   : > { %v552_v63 = vmul.f32 %v1051_v61, %v550_v62 }
 0x4a4   : > { %554 = vrot.lane.b32.xlu1 %v552_v63, %s1297_s24 }
 0x516   : > { %v555_v0 = vpop.permute.xlu1 %554 }
 0x517   : > { %v557_v1 = vadd.f32 %v555_v0, %v493_v31 }
 0x519   : > { %1052 = vtanh.f32 %v557_v1 }
 0x523   : > { %v1053_v2 = vpop.eup %1052 }
 0x524   : > { %561 = vrot.lane.b32.xlu0 %v1053_v2, %s1298_s26 }
 0x596   : > { %v562_v4 = vpop.permute.xlu0 %561 }
 0x597   : > { %v564_v6 = vmul.f32 %v562_v4, %v559_v3 }
 0x599   : > { %v566_v7 = vadd.f32 %v565_v5, %v564_v6 }
 0x59b   : > { %v569_v8 = vpack.c.bf16 %v566_v7, %v566_v7 }
 0x59d   : > { %571 = vrot.lane.b32.xlu1 %v569_v8, %s1298_s26 }
 0x60f   : > { %v572_v9 = vpop.permute.xlu1 %571 }
 0x610   : > { %931 = vmatmul.mubr.msk.bf16.vlgmr.msra.gmra.mrb[4].mxu1 %vm422_vm3, %v572_v9 }
 0x6e3   : > { %v610_v10 = vpop.f32.mrb[4].mxu1 }
 0x6e4   : > { %v611_v11 = vadd.f32 %v1578_v17, %v610_v10  ;;  %v932_v12 = vpop.f32.mrb[5].mxu1 }
 0x6e5   : > { %v613_v13 = vpop.f32.mrb[6].mxu1 }
 0x6e6   : > { %624 = vrot.lane.b32.xlu0 %v611_v11, %s1297_s24  ;;  %v933_v14 = vpop.f32.mrb[7].mxu1  ;;  %v616_v15 = vadd.f32 %v611_v11, %v1580_v22 }
 0x6e8   : > { %v876_v16 = vmul.f32 -1.442695, %v616_v15 }
 0x6ea   : > { %1054 = vpow2.f32 %v876_v16 }
 0x6f4   : > { %v1055_v18 = vpop.eup %1054 }
 0x6f5   : > { %v620_v19 = vadd.f32 1.0, %v1055_v18 }
 0x6f7   : > { %1056 = vrcp.f32 %v620_v19 }
 0x701   : > { %v1057_v20 = vpop.eup %1056 }
 0x702   : > { %v634_v27 = vsub.f32 1.0, %v1057_v20  ;;  %v640_v30 = vmul.f32 %v1057_v20, %v566_v7 }
 0x758   : > { %v625_v21 = vpop.permute.xlu0 %624 }
 0x759   : > { %v627_v23 = vmul.f32 %v1057_v20, %v625_v21 }
 0x75b   : > { %629 = vrot.lane.b32.xlu1 %v627_v23, %s1297_s24 }
 0x7cd   : > { %v630_v24 = vpop.permute.xlu1 %629 }
 0x7ce   : > { %v632_v25 = vadd.f32 %v630_v24, %v1580_v22 }
 0x7d0   : > { %1058 = vtanh.f32 %v632_v25 }
 0x7da   : > { %v1059_v26 = vpop.eup %1058 }
 0x7db   : > { %636 = vrot.lane.b32.xlu0 %v1059_v26, %s1298_s26 }
 0x84d   : > { %v637_v28 = vpop.permute.xlu0 %636 }
 0x84e   : > { %v639_v31 = vmul.f32 %v637_v28, %v634_v27 }
 0x850   : > { %v641_v32 = vadd.f32 %v640_v30, %v639_v31 }
 0x852   : > { %v644_v33 = vpack.c.bf16 %v641_v32, %v641_v32 }
 0x854   : > { %646 = vrot.lane.b32.xlu1 %v644_v33, %s1298_s26 }
 0x8c6   : > { %v647_v34 = vpop.permute.xlu1 %646 }
 0x8c7   : > { %939 = vmatmul.mubr.msk.bf16.vlgmr.msra.gmra.mrb[8].mxu0 %vm422_vm3, %v647_v34 }
 0x99a   : > { %v685_v35 = vpop.f32.mrb[8].mxu0 }
 0x99b   : > { %v686_v36 = vadd.f32 %v1578_v17, %v685_v35  ;;  %v940_v37 = vpop.f32.mrb[9].mxu0 }
 0x99c   : > { %v688_v22 = vpop.f32.mrb[10].mxu0 }
 0x99d   : > { %699 = vrot.lane.b32.xlu0 %v686_v36, %s1297_s24  ;;  %v941_v38 = vpop.f32.mrb[11].mxu0  ;;  %v691_v39 = vadd.f32 %v686_v36, %v1583_v29 }
 0x99f   : > { %v878_v40 = vmul.f32 -1.442695, %v691_v39 }
 0x9a1   : > { %1060 = vpow2.f32 %v878_v40 }
 0x9ab   : > { %v1061_v41 = vpop.eup %1060 }
 0x9ac   : > { %v695_v42 = vadd.f32 1.0, %v1061_v41 }
 0x9ae   : > { %1062 = vrcp.f32 %v695_v42 }
 0x9b8   : > { %v1063_v43 = vpop.eup %1062 }
 0x9b9   : > { %v709_v48 = vsub.f32 1.0, %v1063_v43  ;;  %v715_v50 = vmul.f32 %v1063_v43, %v641_v32 }
 0xa0f   : > { %v700_v44 = vpop.permute.xlu0 %699 }
 0xa10   : > { %v702_v45 = vmul.f32 %v1063_v43, %v700_v44 }
 0xa12   : > { %704 = vrot.lane.b32.xlu1 %v702_v45, %s1297_s24 }
 0xa84   : > { %v705_v17 = vpop.permute.xlu1 %704 }
 0xa85   : > { %v707_v46 = vadd.f32 %v705_v17, %v1583_v29 }
 0xa87   : > { %1064 = vtanh.f32 %v707_v46 }
 0xa91   : > { %v1065_v47 = vpop.eup %1064 }
 0xa92   : > { %711 = vrot.lane.b32.xlu0 %v1065_v47, %s1298_s26 }
 0xb04   : > { %v712_v49 = vpop.permute.xlu0 %711 }
 0xb05   : > { %v714_v51 = vmul.f32 %v712_v49, %v709_v48 }
 0xb07   : > { %v716_v52 = vadd.f32 %v715_v50, %v714_v51 }
 0xb09   : > { %718 = vrot.lane.b32.xlu1 %v716_v52, %s1298_s26 }
 0xb7b   : > { %v719_v29 = vpop.permute.xlu1 %718 }
 0xb7c   : > { %721 = vst.msk [vmem:[%s293_s8] sm:$0xff] %vm422_vm3, %v719_v29 }
 0xb7d   : > { %1221 = shalt.err (!%p1218_p13)
}
 0xb7e   : > { %s1222_s6 = scalar_lea.hbm %s1621_s10, 128  ;;  %s1226_s24 = scalar_lea.hbm %s1671_s5, 256 }
 0xb7f   : > { %p1223_p0 = scmp.ne.s32.totalorder %s1621_s10, %s1222_s6  ;;  %p1227_p11 = scmp.lt.u32.totalorder %s1621_s10, %s1671_s5 }
 0xb80   : > { %p1228_p12 = scmp.lt.u32.totalorder %s1226_s24, %s1222_s6  ;;  %p1230_p4 = scmp.lt.u32.totalorder %s1222_s6, %s1621_s10 }
 0xb81   : > { %p1224_p5 = pnand %p1223_p0, %p1487_p1 }
 0xb82   : > { %p1229_p2 = por %p1228_p12, %p1227_p11 }
 0xb83   : > { %p1225_p9 = pneg %p1224_p5 }
 0xb84   : > { %p1231_p6 = por %p1230_p4, %p1229_p2 }
 0xb86   : > { %p1232_p8 = pnand %p1231_p6, %p1225_p9 }
 0xb88   : > { %1235 = shalt.err (!%p1232_p8)
}
 0xb89   : > { %961 = dma.vmem_to_hbm [thread:$0]  (%p1487_p1), %s1623_s30, 128, %s1621_s10, %s723_s12  }
 0xb8a PF: > { %s748_s11 = sand.u32 1, %s1270_s18   ;;  %p1689_p3 = scmp.ne.s32.totalorder %s1676_s25, 0 }
 0xb8b   : > { %p1690_p7 = scmp.ge.s32.totalorder %s1282_s21, 2  ;;  %s749_s8 = scalar_lea.sflag [#allocation4], %s748_s11 }
 0xb8d   : > { %p981_p10 = pnand %p1690_p7, %p1689_p3 }
 0xb8f   : > { %1265 = dma.done.wait (!%p981_p10), %s749_s8, 128  }
 0xb90   : > { %1267 = vsyncadd (!%p981_p10), %s749_s8, 4294967168  ;;  %p20_p13 = scmp.ge.s32.totalorder %s1477_s14, 4   ;;  %s1691_s18 = smov %s1274_s19 }
 0xb91   : > { %s1692_s19 = smov %s1278_s20  ;;  %s1693_s20 = smov %s1493_s16 }
 0xb92   : > { %s1694_s21 = smov %s1477_s14  ;;  %22 = sbr.rel (!%p20_p13) target bundleno = 7 (0x7), region = 101 }
 0xb99   :  { %754 = vsyncpa [#allocation3], 1 }
 0xb9a   :  { %756 = vsyncpa [#allocation3 + $0x1], 1 }
 0xb9b   :  { %757 = vsyncpa [#allocation6], 1 }
 0xb9c   :  { %758 = vsyncpa [#allocation9], 1 }
 0xb9d   :  { %759 = vsyncpa [#allocation4], 1 }
 0xb9e   :  { %761 = vsyncpa [#allocation4 + $0x1], 1 }

</bundles_post_ra>
